<compile_context>
chip_gen: v6e
topology: v6e:2x2x1
jax: 0.10.0
libtpu: 0.0.40
codegen_flags: <defaults>
</compile_context>

<pallas_src>
import jax
import jax.numpy as jnp
from jax.experimental import pallas as pl
from jax.experimental.pallas import tpu as pltpu


# ----------------------------------------------------------------------------
# VMEM budgeting (per generation).
# ----------------------------------------------------------------------------
def _vmem_budget_bytes() -> int:
    """Max scoped-VMEM we are willing to request, leaving compiler headroom."""
    try:
        cap = int(pltpu.get_tpu_info().vmem_capacity_bytes)
    except Exception:            # info unavailable -> assume smallest (v7x, 64 MiB)
        cap = 64 << 20
    if cap <= (64 << 20):
        return 48 << 20          # v7x-class: 64 MiB physical per TC
    return 96 << 20              # v5e / v6e: 128 MiB physical


def _vmem_limit(need_bytes: int, budget: int) -> int:
    """Request what is needed (+2 MiB slack), never the whole budget."""
    return int(min(budget, max(need_bytes + (2 << 20), 16 << 20)))


# ----------------------------------------------------------------------------
# Kernels.
# ----------------------------------------------------------------------------
def _fused_small_kernel(x1_ref, x2_ref, o_ref):
    """Single grid step: both matmuls + all four concat slabs in one shot."""
    n = x1_ref.shape[0]
    a1 = x1_ref[...].astype(jnp.bfloat16)   # MXU-native inputs, f32 accumulation
    a2 = x2_ref[...].astype(jnp.bfloat16)
    v1 = jnp.dot(a1, a1, preferred_element_type=jnp.float32)
    v2 = jnp.dot(a2, a2, preferred_element_type=jnp.float32)
    o_ref[:, 0 * n:1 * n] = v1
    o_ref[:, 1 * n:2 * n] = v1
    o_ref[:, 2 * n:3 * n] = v2
    o_ref[:, 3 * n:4 * n] = v2


def _resident_rhs_kernel(lhs_ref, rhs_ref, o_ref):
    """grid = (group, row-tile); full (n, n) RHS resident, no K axis."""
    n = rhs_ref.shape[1]
    r = jnp.dot(lhs_ref[...], rhs_ref[...], preferred_element_type=jnp.float32)
    o_ref[:, :n] = r           # compute once ...
    o_ref[:, n:] = r           # ... store twice (the two duplicate slabs)


def _ktiled_kernel(lhs_ref, rhs_ref, o_ref):
    """grid = (group, row-tile, K); accumulate directly into the f32 output."""
    k = pl.program_id(2)
    n = rhs_ref.shape[1]
    part = jnp.dot(lhs_ref[...], rhs_ref[...], preferred_element_type=jnp.float32)

    @pl.when(k == 0)
    def _init():
        o_ref[:, :n] = part

    @pl.when(k > 0)
    def _accumulate():
        o_ref[:, :n] += part

    @pl.when(k == pl.num_programs(2) - 1)
    def _duplicate():
        o_ref[:, n:] = o_ref[:, :n]


# ----------------------------------------------------------------------------
# Wrapper.
# ----------------------------------------------------------------------------
def mm_cat(x1: jax.Array, x2: jax.Array) -> jax.Array:
    """out = concatenate([x1@x1, x1@x1, x2@x2, x2@x2], axis=1), float32."""
    x1 = jnp.asarray(x1, jnp.float32)
    x2 = jnp.asarray(x2, jnp.float32)
    assert x1.ndim == 2 and x1.shape[0] == x1.shape[1], "x1 must be square"
    assert x2.ndim == 2 and x2.shape[0] == x2.shape[1], "x2 must be square"
    assert x1.shape[0] == x2.shape[0], "row counts must match for cat(dim=1)"
    n = x1.shape[0]
    assert n % 128 == 0, "n must be a multiple of 128 (lane-aligned slabs/tiles)"

    budget = _vmem_budget_bytes()
    out_shape = jax.ShapeDtypeStruct((n, 4 * n), jnp.float32)
    flops = 4 * n ** 3                       # two n^3 matmuls, 2*n^3 flops each
    out_bytes = n * 4 * n * 4                # f32 writeback (dominant traffic)

    # --------- tier 1: everything resident, single grid step -----------------
    # VMEM: x1,x2 dbl-buffered f32 (16 n^2) + out dbl-buffered f32 (32 n^2)
    #       + in-kernel temps (bf16 copies + f32 dot results, ~16 n^2).
    need1 = 64 * n * n
    if need1 <= budget:
        return pl.pallas_call(
            _fused_small_kernel,
            out_shape=out_shape,
            grid_spec=pltpu.PrefetchScalarGridSpec(
                num_scalar_prefetch=0,
                grid=(1,),
                in_specs=[
                    pl.BlockSpec((n, n), lambda i: (0, 0)),
                    pl.BlockSpec((n, n), lambda i: (0, 0)),
                ],
                out_specs=pl.BlockSpec((n, 4 * n), lambda i: (0, 0)),
            ),
            compiler_params=pltpu.CompilerParams(
                dimension_semantics=("arbitrary",),
                vmem_limit_bytes=_vmem_limit(need1, budget),
            ),
            cost_estimate=pl.CostEstimate(
                flops=flops, transcendentals=0,
                bytes_accessed=2 * n * n * 4 + out_bytes),
        )(x1, x2)

    # Tiers 2/3 re-read x_g from HBM (several row tiles / RHS panels), so the
    # upfront bf16 cast pays for itself; accumulation stays f32.
    xs = jnp.stack([x1, x2]).astype(jnp.bfloat16)        # (2, n, n)

    # --------- tier 2: resident (n, n) bf16 RHS, no K axis -------------------
    for tm in (n, 512, 256, 128):
        if tm > n or n % tm:
            continue
        # lhs bf16 dbl-buf + rhs bf16 dbl-buf + out f32 dbl-buf + dot temp.
        need2 = 2 * tm * n * 2 + 2 * n * n * 2 + 2 * tm * 2 * n * 4 + tm * n * 4
        if need2 > budget:
            continue
        return pl.pallas_call(
            _resident_rhs_kernel,
            out_shape=out_shape,
            grid_spec=pltpu.PrefetchScalarGridSpec(
                num_scalar_prefetch=0,
                grid=(2, n // tm),
                in_specs=[
                    pl.BlockSpec((pl.Squeezed(), tm, n), lambda g, i: (g, i, 0)),
                    pl.BlockSpec((pl.Squeezed(), n, n), lambda g, i: (g, 0, 0)),
                ],
                out_specs=pl.BlockSpec((tm, 2 * n), lambda g, i: (i, g)),
            ),
            compiler_params=pltpu.CompilerParams(
                dimension_semantics=("parallel", "parallel"),
                vmem_limit_bytes=_vmem_limit(need2, budget),
            ),
            cost_estimate=pl.CostEstimate(
                flops=flops, transcendentals=0,
                bytes_accessed=2 * (2 * n * n * 2) + out_bytes),
        )(xs, xs)

    # --------- tier 3: (group, row-tile, K) grid, accumulate in output -------
    tk = 256 if n % 256 == 0 else 128
    tm, out_buffers = 128, 1                  # safe fallback
    for cand_tm in (512, 256, 128):           # prefer big tm (fewer RHS refetches)
        if n % cand_tm:
            continue
        for bufs in (2, 1):                   # shrink output buffering before tm
            need3 = (2 * cand_tm * tk * 2 + 2 * tk * n * 2
                     + bufs * cand_tm * 2 * n * 4 + cand_tm * n * 4)
            if need3 <= budget:
                tm, out_buffers = cand_tm, bufs
                break
        else:
            continue
        break
    need3 = (2 * tm * tk * 2 + 2 * tk * n * 2
             + out_buffers * tm * 2 * n * 4 + tm * n * 4)

    out_spec_kwargs = {}
    if out_buffers == 1:
        # The output block is written back only once per n/tk K-steps; a single
        # buffer frees tm*2n*4 bytes (matters most on v7x's 64 MiB VMEM).
        out_spec_kwargs["pipeline_mode"] = pl.Buffered(1)

    return pl.pallas_call(
        _ktiled_kernel,
        out_shape=out_shape,
        grid_spec=pltpu.PrefetchScalarGridSpec(
            num_scalar_prefetch=0,
            grid=(2, n // tm, n // tk),
            in_specs=[
                pl.BlockSpec((pl.Squeezed(), tm, tk), lambda g, i, k: (g, i, k)),
                pl.BlockSpec((pl.Squeezed(), tk, n), lambda g, i, k: (g, k, 0)),
            ],
            out_specs=pl.BlockSpec((tm, 2 * n), lambda g, i, k: (i, g),
                                   **out_spec_kwargs),
        ),
        compiler_params=pltpu.CompilerParams(
            dimension_semantics=("parallel", "parallel", "arbitrary"),
            vmem_limit_bytes=_vmem_limit(need3, budget),
        ),
        cost_estimate=pl.CostEstimate(
            flops=flops, transcendentals=0,
            # RHS panel is re-fetched once per row tile (n/tm amplification).
            bytes_accessed=(2 * n * n * 2
                            + 2 * (n // tm) * (n * n * 2)
                            + out_bytes)),
    )(xs, xs)


if __name__ == "__main__":
    N = 256   # small test size; exercises tier 1 (single fused grid step)
    key = jax.random.PRNGKey(0)
    k1, k2 = jax.random.split(key)
    x1 = jax.random.normal(k1, (N, N), dtype=jnp.float32)
    x2 = jax.random.normal(k2, (N, N), dtype=jnp.float32)

    out = jax.block_until_ready(mm_cat(x1, x2))

    # Reference at matching precision (bf16 MXU inputs, f32 accumulation).
    x1b = x1.astype(jnp.bfloat16)
    x2b = x2.astype(jnp.bfloat16)
    v1 = jnp.dot(x1b, x1b, preferred_element_type=jnp.float32)
    v2 = jnp.dot(x2b, x2b, preferred_element_type=jnp.float32)
    ref = jnp.concatenate([v1, v1, v2, v2], axis=1)

    assert out.shape == (N, 4 * N), out.shape
    max_err = float(jnp.max(jnp.abs(out - ref)))
    assert jnp.allclose(out, ref, atol=2e-2, rtol=2e-2), max_err
    print("KERNEL_OK")
</pallas_src>

<mosaic_0001>
module attributes {stable_mosaic.version = 11 : i64} {
  func.func @_fused_small_kernel(%arg0: i32, %arg1: memref<256x256xf32, #tpu.memory_space<vmem>>, %arg2: memref<256x256xf32, #tpu.memory_space<vmem>>, %arg3: memref<256x1024xf32, #tpu.memory_space<vmem>>) attributes {dimension_semantics = [#tpu.dimension_semantics<arbitrary>], iteration_bounds = array<i64: 1>, scalar_prefetch = 0 : i64, scratch_operands = 0 : i64, tpu.core_type = #tpu.core_type<tc>, window_params = [{pipeline_mode = #tpu.pipeline_mode<synchronous>, transform_indices = @transform_0, window_bounds = array<i64: 256, 256>}, {pipeline_mode = #tpu.pipeline_mode<synchronous>, transform_indices = @transform_1, window_bounds = array<i64: 256, 256>}, {pipeline_mode = #tpu.pipeline_mode<synchronous>, transform_indices = @transform_2, window_bounds = array<i64: 256, 1024>}]} {
    %c0 = arith.constant 0 : index
    %c0_0 = arith.constant 0 : index
    %0 = vector.load %arg1[%c0, %c0_0] : memref<256x256xf32, #tpu.memory_space<vmem>>, vector<256x256xf32>
    %1 = arith.truncf %0 : vector<256x256xf32> to vector<256x256xbf16>
    %c0_1 = arith.constant 0 : index
    %c0_2 = arith.constant 0 : index
    %2 = vector.load %arg2[%c0_1, %c0_2] : memref<256x256xf32, #tpu.memory_space<vmem>>, vector<256x256xf32>
    %3 = arith.truncf %2 : vector<256x256xf32> to vector<256x256xbf16>
    %cst = arith.constant dense<0.000000e+00> : vector<256x256xf32>
    %4 = tpu.matmul %1, %1, %cst {dimension_numbers = #tpu.dot_dimension_numbers<[1], [0], [0], [1], [0, 0, 1, 1], [], []>} : vector<256x256xbf16>, vector<256x256xbf16>, vector<256x256xf32> -> vector<256x256xf32>
    %cst_3 = arith.constant dense<0.000000e+00> : vector<256x256xf32>
    %5 = tpu.matmul %3, %3, %cst_3 {dimension_numbers = #tpu.dot_dimension_numbers<[1], [0], [0], [1], [0, 0, 1, 1], [], []>} : vector<256x256xbf16>, vector<256x256xbf16>, vector<256x256xf32> -> vector<256x256xf32>
    %c0_4 = arith.constant 0 : index
    %c0_5 = arith.constant 0 : index
    %6 = vector.load %arg3[%c0_4, %c0_5] : memref<256x1024xf32, #tpu.memory_space<vmem>>, vector<256x256xf32>
    tpu.vector_store %arg3[%c0_4, %c0_5], %4 {strides = array<i32>} : memref<256x1024xf32, #tpu.memory_space<vmem>>, vector<256x256xf32>,
    %c0_6 = arith.constant 0 : index
    %c256 = arith.constant 256 : index
    %7 = vector.load %arg3[%c0_6, %c256] : memref<256x1024xf32, #tpu.memory_space<vmem>>, vector<256x256xf32>
    tpu.vector_store %arg3[%c0_6, %c256], %4 {strides = array<i32>} : memref<256x1024xf32, #tpu.memory_space<vmem>>, vector<256x256xf32>,
    %c0_7 = arith.constant 0 : index
    %c512 = arith.constant 512 : index
    %8 = vector.load %arg3[%c0_7, %c512] : memref<256x1024xf32, #tpu.memory_space<vmem>>, vector<256x256xf32>
    tpu.vector_store %arg3[%c0_7, %c512], %5 {strides = array<i32>} : memref<256x1024xf32, #tpu.memory_space<vmem>>, vector<256x256xf32>,
    %c0_8 = arith.constant 0 : index
    %c768 = arith.constant 768 : index
    %9 = vector.load %arg3[%c0_8, %c768] : memref<256x1024xf32, #tpu.memory_space<vmem>>, vector<256x256xf32>
    tpu.vector_store %arg3[%c0_8, %c768], %5 {strides = array<i32>} : memref<256x1024xf32, #tpu.memory_space<vmem>>, vector<256x256xf32>,
    return
  }
  func.func @transform_0(%arg0: i32) -> (i32, i32) {
    %c0_i32 = arith.constant 0 : i32
    %c0_i32_0 = arith.constant 0 : i32
    %c0_i32_1 = arith.constant 0 : i32
    return %c0_i32, %c0_i32_0 : i32, i32
  }
  func.func @transform_1(%arg0: i32) -> (i32, i32) {
    %c0_i32 = arith.constant 0 : i32
    %c0_i32_0 = arith.constant 0 : i32
    %c0_i32_1 = arith.constant 0 : i32
    return %c0_i32, %c0_i32_0 : i32, i32
  }
  func.func @transform_2(%arg0: i32) -> (i32, i32) {
    %c0_i32 = arith.constant 0 : i32
    %c0_i32_0 = arith.constant 0 : i32
    %c0_i32_1 = arith.constant 0 : i32
    return %c0_i32, %c0_i32_0 : i32, i32
  }
}

</mosaic_0001>

<bundles_post_ra>
// kernel: tpu_custom_call.1
= control target key start
LH: loop header
LB: loop body
LE: loop exit
PB: predicated region body
PF: predicated region fallthrough
CT: control target
= control target key end

     0   :  { %7 = vsyncpa [#allocation3], 0  ;;  %s1216_s0 = inlined_call_operand.hbm [shape: f32[256,256], index: 0, kind: input, shape index: {}]   ;;  %s1217_s1 = inlined_call_operand.hbm [shape: f32[256,256], index: 1, kind: input, shape index: {}]   ;;  %s1218_s2 = inlined_call_operand.hbm [shape: f32[256,1024], index: 2, kind: output, shape index: {}]  }
   0x1   :  { %8 = vsyncpa [#allocation6], 0 }
   0x2   :  { %9 = vsyncpa [#allocation4], 0  ;;  %s965_s9 = smov [#allocation2]  }
   0x3   :  { %s15_s10 = sshll.u32 %s965_s9, 4  ;;  %s16_s10 = int_to_ptr.vmem [resolvable:$true] %s15_s10 }
   0x4   :  { %s907_s11 = scalar_lea.vmem %s16_s10, 8192  ;;  %p912_p1 = scmp.lt.s32.totalorder %s16_s10, %s16_s10 }
   0x5   :  { %p908_p0 = scmp.ne.s32.totalorder %s16_s10, %s907_s11  ;;  %p913_p2 = scmp.lt.s32.totalorder %s907_s11, %s907_s11 }
   0x7   :  { %p914_p3 = por %p913_p2, %p912_p1 }
   0x9   :  { %p915_p4 = pnand %p914_p3, %p908_p0 }
   0xb   :  { %918 = shalt.err (!%p915_p4)
}
   0xc   :  { %s966_s12 = smov 256   ;;  %s967_s13 = smov 16  }
   0xd   :  { %21 = dma.hbm_to_vmem [thread:$0]  %s1216_s0, 8192, %s16_s10, [#allocation3], %s966_s12, %s966_s12, %s967_s13  }
   0xe   :  { %s968_s16 = smov [#allocation5]  }
   0xf   :  { %s27_s17 = sshll.u32 %s968_s16, 4  ;;  %s28_s17 = int_to_ptr.vmem [resolvable:$true] %s27_s17 }
  0x10   :  { %s927_s18 = scalar_lea.vmem %s28_s17, 8192  ;;  %p932_p6 = scmp.lt.s32.totalorder %s28_s17, %s28_s17 }
  0x11   :  { %p928_p5 = scmp.ne.s32.totalorder %s28_s17, %s927_s18  ;;  %p933_p7 = scmp.lt.s32.totalorder %s927_s18, %s927_s18 }
  0x13   :  { %p934_p8 = por %p933_p7, %p932_p6 }
  0x15   :  { %p935_p9 = pnand %p934_p8, %p928_p5 }
  0x17   :  { %938 = shalt.err (!%p935_p9)
}
  0x18   :  { %33 = dma.hbm_to_vmem [thread:$0]  %s1217_s1, 8192, %s28_s17, [#allocation6], %s966_s12, %s966_s12, %s967_s13  }
  0x19   :  { %959 = dma.done.wait [#allocation3], 8192  }
  0x1a   :  { %960 = vsyncadd [#allocation3], 4294959104 }
  0x1b   :  { %961 = dma.done.wait [#allocation6], 8192  }
  0x1c   :  { %962 = vsyncadd [#allocation6], 4294959104  ;;  %v69_v0 = vld [vmem:[#allocation2 + $0xe8] sm:$0xff]  ;;  %v71_v1 = vld [vmem:[#allocation2 + $0xf8] sm:$0xff]  ;;  %s969_s0 = smov [#allocation7]  }
  0x1d   :  { %v165_v2 = vld [vmem:[#allocation5 + $0xe8] sm:$0xff]  ;;  %v993_v3 = vpack.c.bf16 %v71_v1, %v69_v0  ;;  %v167_v4 = vld [vmem:[#allocation5 + $0xf8] sm:$0xff]  ;;  %v68_v5 = vld [vmem:[#allocation2 + $0xe0] sm:$0xff]  ;;  %s879_s1 = sshll.u32 %s969_s0, 4  ;;  %s880_s1 = int_to_ptr.vmem [resolvable:$true] %s879_s1 }
  0x1e   :  { %v70_v6 = vld [vmem:[#allocation2 + $0xf0] sm:$0xff]  ;;  %v995_v7 = vpack.c.bf16 %v167_v4, %v165_v2  ;;  %v164_v9 = vld [vmem:[#allocation5 + $0xe0] sm:$0xff]  ;;  %v65_v11 = vld [vmem:[#allocation2 + $0xc8] sm:$0xff]  ;;  %s939_s21 = scalar_lea.vmem %s880_s1, 32768  ;;  %p944_p11 = scmp.lt.s32.totalorder %s880_s1, %s880_s1 }
  0x1f   :  { %v997_v8 = vpack.c.bf16 %v70_v6, %v68_v5  ;;  %v166_v10 = vld [vmem:[#allocation5 + $0xf0] sm:$0xff]  ;;  %232 = vmatprep.subr.bf16.mxu0 %v993_v3  ;;  %v67_v13 = vld [vmem:[#allocation2 + $0xd8] sm:$0xff]  ;;  %v161_v14 = vld [vmem:[#allocation5 + $0xc8] sm:$0xff]  ;;  %p940_p10 = scmp.ne.s32.totalorder %s880_s1, %s939_s21  ;;  %p945_p12 = scmp.lt.s32.totalorder %s939_s21, %s939_s21 }
  0x20   :  { %v1000_v12 = vpack.c.bf16 %v166_v10, %v164_v9  ;;  %v163_v15 = vld [vmem:[#allocation5 + $0xd8] sm:$0xff]  ;;  %425 = vmatprep.subr.bf16.mxu1 %v995_v7  ;;  %v1004_v16 = vpack.c.bf16 %v67_v13, %v65_v11  ;;  %v64_v18 = vld [vmem:[#allocation2 + $0xc0] sm:$0xff]  ;;  %v66_v19 = vld [vmem:[#allocation2 + $0xd0] sm:$0xff] }
  0x21   :  { %233 = vmatpush1.bf16.msra.mxu0 %v997_v8  ;;  %v1006_v17 = vpack.c.bf16 %v163_v15, %v161_v14  ;;  %v160_v20 = vld [vmem:[#allocation5 + $0xc0] sm:$0xff]  ;;  %v1009_v21 = vpack.c.bf16 %v66_v19, %v64_v18  ;;  %v162_v22 = vld [vmem:[#allocation5 + $0xd0] sm:$0xff]  ;;  %v61_v23 = vld [vmem:[#allocation2 + $0xa8] sm:$0xff]  ;;  %p946_p13 = por %p945_p12, %p944_p11 }
  0x22   :  { %426 = vmatpush1.bf16.msra.mxu1 %v1000_v12  ;;  %v63_v24 = vld [vmem:[#allocation2 + $0xb8] sm:$0xff]  ;;  %234 = vmatprep.subr.bf16.mxu0 %v1004_v16  ;;  %v1013_v25 = vpack.c.bf16 %v162_v22, %v160_v20  ;;  %v157_v27 = vld [vmem:[#allocation5 + $0xa8] sm:$0xff]  ;;  %v60_v29 = vld [vmem:[#allocation2 + $0xa0] sm:$0xff] }
  0x23   :  { %427 = vmatprep.subr.bf16.mxu1 %v1006_v17  ;;  %v1015_v26 = vpack.c.bf16 %v63_v24, %v61_v23  ;;  %v159_v28 = vld [vmem:[#allocation5 + $0xb8] sm:$0xff]  ;;  %v62_v31 = vld [vmem:[#allocation2 + $0xb0] sm:$0xff]  ;;  %v156_v32 = vld [vmem:[#allocation5 + $0xa0] sm:$0xff]  ;;  %p947_p0 = pnand %p946_p13, %p940_p10 }
  0x24   :  { %v1017_v30 = vpack.c.bf16 %v159_v28, %v157_v27  ;;  %v158_v33 = vld [vmem:[#allocation5 + $0xb0] sm:$0xff]  ;;  %v1020_v34 = vpack.c.bf16 %v62_v31, %v60_v29  ;;  %v57_v35 = vld [vmem:[#allocation2 + $0x88] sm:$0xff]  ;;  %v59_v36 = vld [vmem:[#allocation2 + $0x98] sm:$0xff] }
  0x25   :  { %235 = vmatpush1.bf16.msra.mxu0 %v1009_v21  ;;  %v153_v37 = vld [vmem:[#allocation5 + $0x88] sm:$0xff]  ;;  %v1024_v38 = vpack.c.bf16 %v158_v33, %v156_v32  ;;  %v1026_v39 = vpack.c.bf16 %v59_v36, %v57_v35  ;;  %v155_v40 = vld [vmem:[#allocation5 + $0x98] sm:$0xff]  ;;  %v56_v41 = vld [vmem:[#allocation2 + $0x80] sm:$0xff] }
  0x26   :  { %428 = vmatpush1.bf16.msra.mxu1 %v1013_v25  ;;  %236 = vmatprep.subr.bf16.mxu0 %v1015_v26  ;;  %v58_v42 = vld [vmem:[#allocation2 + $0x90] sm:$0xff]  ;;  %v1029_v43 = vpack.c.bf16 %v155_v40, %v153_v37  ;;  %v152_v44 = vld [vmem:[#allocation5 + $0x80] sm:$0xff]  ;;  %v53_v46 = vld [vmem:[#allocation2 + $0x68] sm:$0xff] }
  0x27   :  { %429 = vmatprep.subr.bf16.mxu1 %v1017_v30  ;;  %v154_v45 = vld [vmem:[#allocation5 + $0x90] sm:$0xff]  ;;  %v55_v47 = vld [vmem:[#allocation2 + $0x78] sm:$0xff]  ;;  %v149_v48 = vld [vmem:[#allocation5 + $0x68] sm:$0xff]  ;;  %v1032_v50 = vpack.c.bf16 %v58_v42, %v56_v41 }
  0x28   :  { %v151_v49 = vld [vmem:[#allocation5 + $0x78] sm:$0xff]  ;;  %v1036_v51 = vpack.c.bf16 %v154_v45, %v152_v44  ;;  %v1038_v52 = vpack.c.bf16 %v55_v47, %v53_v46  ;;  %v52_v53 = vld [vmem:[#allocation2 + $0x60] sm:$0xff]  ;;  %v54_v54 = vld [vmem:[#allocation2 + $0x70] sm:$0xff] }
  0x29   :  { %237 = vmatpush1.bf16.msra.mxu0 %v1020_v34  ;;  %v148_v55 = vld [vmem:[#allocation5 + $0x60] sm:$0xff]  ;;  %v1041_v56 = vpack.c.bf16 %v151_v49, %v149_v48  ;;  %v150_v57 = vld [vmem:[#allocation5 + $0x70] sm:$0xff]  ;;  %v49_v58 = vld [vmem:[#allocation2 + $0x48] sm:$0xff]  ;;  %v1044_v62 = vpack.c.bf16 %v54_v54, %v52_v53 }
  0x2a   :  { %430 = vmatpush1.bf16.msra.mxu1 %v1024_v38  ;;  %238 = vmatprep.subr.bf16.mxu0 %v1026_v39  ;;  %v51_v59 = vld [vmem:[#allocation2 + $0x58] sm:$0xff]  ;;  %v145_v60 = vld [vmem:[#allocation5 + $0x48] sm:$0xff]  ;;  %v48_v63 = vld [vmem:[#allocation2 + $0x40] sm:$0xff]  ;;  %v1048_v2 = vpack.c.bf16 %v150_v57, %v148_v55 }
  0x2b   :  { %431 = vmatprep.subr.bf16.mxu1 %v1029_v43  ;;  %v147_v61 = vld [vmem:[#allocation5 + $0x58] sm:$0xff]  ;;  %v50_v0 = vld [vmem:[#allocation2 + $0x50] sm:$0xff]  ;;  %v144_v1 = vld [vmem:[#allocation5 + $0x40] sm:$0xff]  ;;  %v1050_v4 = vpack.c.bf16 %v51_v59, %v49_v58 }
  0x2c   :  { %v146_v5 = vld [vmem:[#allocation5 + $0x50] sm:$0xff]  ;;  %v45_v6 = vld [vmem:[#allocation2 + $0x28] sm:$0xff]  ;;  %v47_v9 = vld [vmem:[#allocation2 + $0x38] sm:$0xff]  ;;  %v1053_v10 = vpack.c.bf16 %v147_v61, %v145_v60  ;;  %v1056_v20 = vpack.c.bf16 %v50_v0, %v48_v63 }
  0x2d   :  { %239 = vmatpush1.bf16.msra.mxu0 %v1032_v50  ;;  %v141_v11 = vld [vmem:[#allocation5 + $0x28] sm:$0xff]  ;;  %v143_v13 = vld [vmem:[#allocation5 + $0x38] sm:$0xff]  ;;  %v1060_v23 = vpack.c.bf16 %v146_v5, %v144_v1  ;;  %v1062_v24 = vpack.c.bf16 %v47_v9, %v45_v6  ;;  %v44_v27 = vld [vmem:[#allocation2 + $0x20] sm:$0xff] }
  0x2e   :  { %432 = vmatpush1.bf16.msra.mxu1 %v1036_v51  ;;  %240 = vmatprep.subr.bf16.mxu0 %v1038_v52  ;;  %v41_v14 = vld [vmem:[#allocation2 + $0x8] sm:$0xff]  ;;  %v43_v15 = vld [vmem:[#allocation2 + $0x18] sm:$0xff]  ;;  %v46_v28 = vld [vmem:[#allocation2 + $0x30] sm:$0xff]  ;;  %v1065_v31 = vpack.c.bf16 %v143_v13, %v141_v11 }
  0x2f   :  { %433 = vmatprep.subr.bf16.mxu1 %v1041_v56  ;;  %v137_v18 = vld [vmem:[#allocation5 + $0x8] sm:$0xff]  ;;  %v139_v19 = vld [vmem:[#allocation5 + $0x18] sm:$0xff]  ;;  %v105_v22 = vpack.c.bf16 %v43_v15, %v41_v14  ;;  %v140_v32 = vld [vmem:[#allocation5 + $0x20] sm:$0xff]  ;;  %v1068_v35 = vpack.c.bf16 %v46_v28, %v44_v27 }
  0x30   :  { %v201_v29 = vpack.c.bf16 %v139_v19, %v137_v18  ;;  %v142_v33 = vld [vmem:[#allocation5 + $0x30] sm:$0xff]  ;;  %v40_v37 = vld [vmem:[#allocation2] sm:$0xff]  ;;  %v101_v44 = vld [vmem:[#allocation2 + $0x1e8] sm:$0xff] }
  0x31   :  { %241 = vmatpush1.bf16.msra.mxu0 %v1044_v62  ;;  %264 = vmatprep.mubr.bf16.mxu0 %v105_v22  ;;  %v1072_v36 = vpack.c.bf16 %v142_v33, %v140_v32  ;;  %v42_v40 = vld [vmem:[#allocation2 + $0x10] sm:$0xff]  ;;  %v136_v41 = vld [vmem:[#allocation5] sm:$0xff]  ;;  %v103_v45 = vld [vmem:[#allocation2 + $0x1f8] sm:$0xff] }
  0x32   :  { %434 = vmatpush1.bf16.msra.mxu1 %v1048_v2  ;;  %242 = vmatprep.subr.bf16.mxu0 %v1050_v4  ;;  %v138_v42 = vld [vmem:[#allocation5 + $0x10] sm:$0xff]  ;;  %v197_v46 = vld [vmem:[#allocation5 + $0x1e8] sm:$0xff]  ;;  %v199_v47 = vld [vmem:[#allocation5 + $0x1f8] sm:$0xff]  ;;  %v1076_v48 = vpack.c.bf16 %v42_v40, %v40_v37  ;;  %v1081_v53 = vpack.c.bf16 %v103_v45, %v101_v44 }
  0x33   :  { %435 = vmatprep.subr.bf16.mxu1 %v1053_v10  ;;  %457 = vmatprep.mubr.bf16.mxu1 %v201_v29  ;;  %v1079_v49 = vpack.c.bf16 %v138_v42, %v136_v41  ;;  %v100_v54 = vld [vmem:[#allocation2 + $0x1e0] sm:$0xff]  ;;  %v102_v55 = vld [vmem:[#allocation2 + $0x1f0] sm:$0xff]  ;;  %v1083_v58 = vpack.c.bf16 %v199_v47, %v197_v46  ;;  %v97_v60 = vld [vmem:[#allocation2 + $0x1c8] sm:$0xff] }
  0x34   :  { %1229 = vst [vmem:[#allocation11_spill] sm:$0xff] %v1081_v53  ;;  %v196_v57 = vld [vmem:[#allocation5 + $0x1e0] sm:$0xff]  ;;  %v198_v59 = vld [vmem:[#allocation5 + $0x1f0] sm:$0xff]  ;;  %v99_v61 = vld [vmem:[#allocation2 + $0x1d8] sm:$0xff]  ;;  %v1086_v1 = vpack.c.bf16 %v102_v55, %v100_v54 }
  0x35   :  { %243 = vmatpush1.bf16.msra.mxu0 %v1056_v20  ;;  %1230 = vst [vmem:[#allocation12_spill] sm:$0xff] %v1083_v58  ;;  %v193_v63 = vld [vmem:[#allocation5 + $0x1c8] sm:$0xff]  ;;  %v195_v0 = vld [vmem:[#allocation5 + $0x1d8] sm:$0xff]  ;;  %v1090_v5 = vpack.c.bf16 %v198_v59, %v196_v57  ;;  %v1092_v6 = vpack.c.bf16 %v99_v61, %v97_v60  ;;  %v96_v9 = vld [vmem:[#allocation2 + $0x1c0] sm:$0xff] }
  0x36   :  { %436 = vmatpush1.bf16.msra.mxu1 %v1060_v23  ;;  %244 = vmatprep.subr.bf16.mxu0 %v1062_v24  ;;  %1231 = vst [vmem:[#allocation13_spill] sm:$0xff] %v1086_v1  ;;  %v98_v11 = vld [vmem:[#allocation2 + $0x1d0] sm:$0xff]  ;;  %v192_v13 = vld [vmem:[#allocation5 + $0x1c0] sm:$0xff]  ;;  %v1095_v14 = vpack.c.bf16 %v195_v0, %v193_v63  ;;  %v93_v18 = vld [vmem:[#allocation2 + $0x1a8] sm:$0xff] }
  0x37   :  { %437 = vmatprep.subr.bf16.mxu1 %v1065_v31  ;;  %1232 = vst [vmem:[#allocation14_spill] sm:$0xff] %v1090_v5  ;;  %1233 = vst [vmem:[#allocation15_spill] sm:$0xff] %v1092_v6  ;;  %v194_v15 = vld [vmem:[#allocation5 + $0x1d0] sm:$0xff]  ;;  %v95_v19 = vld [vmem:[#allocation2 + $0x1b8] sm:$0xff]  ;;  %v1098_v28 = vpack.c.bf16 %v98_v11, %v96_v9 }
  0x38   :  { %1234 = vst [vmem:[#allocation16_spill] sm:$0xff] %v1095_v14  ;;  %v191_v27 = vld [vmem:[#allocation5 + $0x1b8] sm:$0xff]  ;;  %v1104_v32 = vpack.c.bf16 %v95_v19, %v93_v18  ;;  %v92_v33 = vld [vmem:[#allocation2 + $0x1a0] sm:$0xff]  ;;  %v94_v37 = vld [vmem:[#allocation2 + $0x1b0] sm:$0xff] }
  0x39   :  { %245 = vmatpush1.bf16.msra.mxu0 %v1068_v35  ;;  %1235 = vst [vmem:[#allocation17_spill] sm:$0xff] %v1098_v28  ;;  %v188_v40 = vld [vmem:[#allocation5 + $0x1a0] sm:$0xff]  ;;  %v190_v42 = vld [vmem:[#allocation5 + $0x1b0] sm:$0xff]  ;;  %v89_v44 = vld [vmem:[#allocation2 + $0x188] sm:$0xff]  ;;  %v1110_v54 = vpack.c.bf16 %v94_v37, %v92_v33 }
  0x3a   :  { %438 = vmatpush1.bf16.msra.mxu1 %v1072_v36  ;;  %246 = vmatprep.subr.bf16.mxu0 %v105_v22  ;;  %v189_v22 = vld [vmem:[#allocation5 + $0x1a8] sm:$0xff]  ;;  %v91_v45 = vld [vmem:[#allocation2 + $0x198] sm:$0xff]  ;;  %v1114_v55 = vpack.c.bf16 %v190_v42, %v188_v40  ;;  %v88_v59 = vld [vmem:[#allocation2 + $0x180] sm:$0xff] }
  0x3b   :  { %439 = vmatprep.subr.bf16.mxu1 %v201_v29  ;;  %v1102_v29 = vpack.c.bf16 %v194_v15, %v192_v13  ;;  %v1107_v41 = vpack.c.bf16 %v191_v27, %v189_v22  ;;  %v185_v46 = vld [vmem:[#allocation5 + $0x188] sm:$0xff]  ;;  %v187_v47 = vld [vmem:[#allocation5 + $0x198] sm:$0xff]  ;;  %1237 = vst [vmem:[#allocation19_spill] sm:$0xff] %v1110_v54  ;;  %v1116_v57 = vpack.c.bf16 %v91_v45, %v89_v44  ;;  %v90_v60 = vld [vmem:[#allocation2 + $0x190] sm:$0xff] }
  0x3c   :  { %1238 = vst [vmem:[#allocation20_spill] sm:$0xff] %v1114_v55  ;;  %v184_v61 = vld [vmem:[#allocation5 + $0x180] sm:$0xff]  ;;  %v1119_v63 = vpack.c.bf16 %v187_v47, %v185_v46  ;;  %v186_v0 = vld [vmem:[#allocation5 + $0x190] sm:$0xff]  ;;  %v85_v9 = vld [vmem:[#allocation2 + $0x168] sm:$0xff]  ;;  %v1122_v18 = vpack.c.bf16 %v90_v60, %v88_v59 }
  0x3d   :  { %247 = vmatpush1.bf16.msra.mxu0 %v1076_v48  ;;  %1236 = vst [vmem:[#allocation18_spill] sm:$0xff] %v1102_v29  ;;  %v87_v11 = vld [vmem:[#allocation2 + $0x178] sm:$0xff]  ;;  %v181_v13 = vld [vmem:[#allocation5 + $0x168] sm:$0xff]  ;;  %v1126_v19 = vpack.c.bf16 %v186_v0, %v184_v61  ;;  %v84_v27 = vld [vmem:[#allocation2 + $0x160] sm:$0xff] }
  0x3e   :  { %440 = vmatpush1.bf16.msra.mxu1 %v1079_v49  ;;  %248 = vmatprep.subr.bf16.mxu0 %v1081_v53  ;;  %v183_v15 = vld [vmem:[#allocation5 + $0x178] sm:$0xff]  ;;  %v1128_v22 = vpack.c.bf16 %v87_v11, %v85_v9  ;;  %v86_v33 = vld [vmem:[#allocation2 + $0x170] sm:$0xff]  ;;  %v180_v37 = vld [vmem:[#allocation5 + $0x160] sm:$0xff] }
  0x3f   :  { %441 = vmatprep.subr.bf16.mxu1 %v1083_v58  ;;  %v1131_v40 = vpack.c.bf16 %v183_v15, %v181_v13  ;;  %v182_v42 = vld [vmem:[#allocation5 + $0x170] sm:$0xff]  ;;  %v81_v44 = vld [vmem:[#allocation2 + $0x148] sm:$0xff]  ;;  %v83_v45 = vld [vmem:[#allocation2 + $0x158] sm:$0xff]  ;;  %v1134_v59 = vpack.c.bf16 %v86_v33, %v84_v27 }
  0x40   :  { %v177_v46 = vld [vmem:[#allocation5 + $0x148] sm:$0xff]  ;;  %v179_v47 = vld [vmem:[#allocation5 + $0x158] sm:$0xff]  ;;  %v1138_v60 = vpack.c.bf16 %v182_v42, %v180_v37  ;;  %v1140_v61 = vpack.c.bf16 %v83_v45, %v81_v44  ;;  %v80_v0 = vld [vmem:[#allocation2 + $0x140] sm:$0xff] }
  0x41   :  { %249 = vmatpush2.bf16.msra.mxu0 %v1086_v1  ;;  %v82_v9 = vld [vmem:[#allocation2 + $0x150] sm:$0xff]  ;;  %v176_v11 = vld [vmem:[#allocation5 + $0x140] sm:$0xff]  ;;  %v1143_v13 = vpack.c.bf16 %v179_v47, %v177_v46  ;;  %v79_v1 = vld [vmem:[#allocation2 + $0x138] sm:$0xff] }
  0x42   :  { %442 = vmatpush2.bf16.msra.mxu1 %v1090_v5  ;;  %250 = vmatprep.subr.bf16.mxu0 %v1092_v6  ;;  %v178_v15 = vld [vmem:[#allocation5 + $0x150] sm:$0xff]  ;;  %v77_v5 = vld [vmem:[#allocation2 + $0x128] sm:$0xff]  ;;  %v175_v33 = vld [vmem:[#allocation5 + $0x138] sm:$0xff]  ;;  %v1146_v58 = vpack.c.bf16 %v82_v9, %v80_v0 }
  0x43   :  { %443 = vmatprep.subr.bf16.mxu1 %v1095_v14  ;;  %v173_v27 = vld [vmem:[#allocation5 + $0x128] sm:$0xff]  ;;  %v1150_v37 = vpack.c.bf16 %v178_v15, %v176_v11  ;;  %v1152_v42 = vpack.c.bf16 %v79_v1, %v77_v5  ;;  %v76_v44 = vld [vmem:[#allocation2 + $0x120] sm:$0xff]  ;;  %v78_v45 = vld [vmem:[#allocation2 + $0x130] sm:$0xff] }
  0x44   :  { %v172_v46 = vld [vmem:[#allocation5 + $0x120] sm:$0xff]  ;;  %v219_v47 = vpack.c.bf16 %v175_v33, %v173_v27  ;;  %v174_v53 = vld [vmem:[#allocation5 + $0x130] sm:$0xff]  ;;  %v169_v14 = vld [vmem:[#allocation5 + $0x108] sm:$0xff]  ;;  %v122_v9 = vpack.c.bf16 %v78_v45, %v76_v44 }
  0x45   :  { %251 = vmatpush2.bf16.msra.mxu0 %v1098_v28  ;;  %v75_v28 = vld [vmem:[#allocation2 + $0x118] sm:$0xff]  ;;  %v218_v1 = vpack.c.bf16 %v174_v53, %v172_v46  ;;  %v72_v11 = vld [vmem:[#allocation2 + $0x100] sm:$0xff]  ;;  %v74_v15 = vld [vmem:[#allocation2 + $0x110] sm:$0xff] }
  0x46   :  { %444 = vmatpush2.bf16.msra.mxu1 %v1102_v29  ;;  %252 = vmatprep.subr.bf16.mxu0 %v1104_v32  ;;  %v73_v29 = vld [vmem:[#allocation2 + $0x108] sm:$0xff]  ;;  %v171_v0 = vld [vmem:[#allocation5 + $0x118] sm:$0xff]  ;;  %v170_v27 = vld [vmem:[#allocation5 + $0x110] sm:$0xff]  ;;  %v120_v33 = vpack.c.bf16 %v74_v15, %v72_v11 }
  0x47   :  { %445 = vmatprep.subr.bf16.mxu1 %v1107_v41  ;;  %v121_v5 = vpack.c.bf16 %v75_v28, %v73_v29  ;;  %v217_v6 = vpack.c.bf16 %v171_v0, %v169_v14 }
  0x49   :  { %253 = vmatpush2.bf16.msra.mxu0 %v1110_v54 }
  0x4a   :  { %446 = vmatpush2.bf16.msra.mxu1 %v1114_v55  ;;  %254 = vmatprep.subr.bf16.mxu0 %v1116_v57  ;;  %v168_v55 = vld [vmem:[#allocation5 + $0x100] sm:$0xff] }
  0x4b   :  { %447 = vmatprep.subr.bf16.mxu1 %v1119_v63  ;;  %v216_v54 = vpack.c.bf16 %v170_v27, %v168_v55 }
  0x4d   :  { %255 = vmatpush2.bf16.msra.mxu0 %v1122_v18 }
  0x4e   :  { %448 = vmatpush2.bf16.msra.mxu1 %v1126_v19  ;;  %256 = vmatprep.subr.bf16.mxu0 %v1128_v22 }
  0x4f   :  { %449 = vmatprep.subr.bf16.mxu1 %v1131_v40 }
  0x51   :  { %257 = vmatpush2.bf16.msra.mxu0 %v1134_v59 }
  0x52   :  { %450 = vmatpush2.bf16.msra.mxu1 %v1138_v60  ;;  %258 = vmatprep.subr.bf16.mxu0 %v1140_v61 }
  0x53   :  { %451 = vmatprep.subr.bf16.mxu1 %v1143_v13 }
  0x55   :  { %259 = vmatpush2.bf16.msra.mxu0 %v1146_v58 }
  0x56   :  { %452 = vmatpush2.bf16.msra.mxu1 %v1150_v37  ;;  %260 = vmatprep.subr.bf16.mxu0 %v1152_v42 }
  0x57   :  { %453 = vmatprep.subr.bf16.mxu1 %v219_v47 }
  0x59   :  { %261 = vmatpush2.bf16.msra.mxu0 %v122_v9 }
  0x5a   :  { %454 = vmatpush2.bf16.msra.mxu1 %v218_v1  ;;  %262 = vmatprep.subr.bf16.mxu0 %v121_v5 }
  0x5b   :  { %455 = vmatprep.subr.bf16.mxu1 %v217_v6 }
  0x5d   :  { %263 = vmatpush2.bf16.msra.mxu0 %v120_v33 }
  0x5e   :  { %456 = vmatpush2.bf16.msra.mxu1 %v216_v54 }
  0x60   :  { %265 = vmatmul.mubr.bf16.vlgmr.msra.gmra.mxu0 %v1076_v48 }
  0x61   :  { %458 = vmatmul.mubr.bf16.vlgmr.msra.gmra.mxu1 %v1079_v49  ;;  %274 = vmatprep.mubr.bf16.mxu0 %v1062_v24 }
  0x62   :  { %467 = vmatprep.mubr.bf16.mxu1 %v1065_v31 }
  0x68   :  { %275 = vmatmul.mubr.bf16.gmra.mxu0 %v1068_v35 }
  0x69   :  { %468 = vmatmul.mubr.bf16.gmra.mxu1 %v1072_v36  ;;  %284 = vmatprep.mubr.bf16.mxu0 %v1050_v4 }
  0x6a   :  { %477 = vmatprep.mubr.bf16.mxu1 %v1053_v10 }
  0x70   :  { %285 = vmatmul.mubr.bf16.gmra.mxu0 %v1056_v20 }
  0x71   :  { %478 = vmatmul.mubr.bf16.gmra.mxu1 %v1060_v23  ;;  %294 = vmatprep.mubr.bf16.mxu0 %v1038_v52 }
  0x72   :  { %487 = vmatprep.mubr.bf16.mxu1 %v1041_v56 }
  0x78   :  { %295 = vmatmul.mubr.bf16.gmra.mxu0 %v1044_v62 }
  0x79   :  { %488 = vmatmul.mubr.bf16.gmra.mxu1 %v1048_v2  ;;  %304 = vmatprep.mubr.bf16.mxu0 %v1026_v39 }
  0x7a   :  { %497 = vmatprep.mubr.bf16.mxu1 %v1029_v43 }
  0x80   :  { %305 = vmatmul.mubr.bf16.gmra.mxu0 %v1032_v50 }
  0x81   :  { %498 = vmatmul.mubr.bf16.gmra.mxu1 %v1036_v51  ;;  %314 = vmatprep.mubr.bf16.mxu0 %v1015_v26  ;;  %v1247_v26 = vld [vmem:[#allocation13_spill] sm:$0xff] }
  0x82   :  { %507 = vmatprep.mubr.bf16.mxu1 %v1017_v30  ;;  %v1248_v30 = vld [vmem:[#allocation14_spill] sm:$0xff] }
  0x88   :  { %315 = vmatmul.mubr.bf16.gmra.mxu0 %v1020_v34 }
  0x89   :  { %508 = vmatmul.mubr.bf16.gmra.mxu1 %v1024_v38  ;;  %324 = vmatprep.mubr.bf16.mxu0 %v1004_v16  ;;  %v1243_v16 = vld [vmem:[#allocation17_spill] sm:$0xff] }
  0x8a   :  { %517 = vmatprep.mubr.bf16.mxu1 %v1006_v17  ;;  %v1244_v17 = vld [vmem:[#allocation18_spill] sm:$0xff] }
  0x90   :  { %325 = vmatmul.mubr.bf16.gmra.mxu0 %v1009_v21  ;;  %v1245_v21 = vld [vmem:[#allocation11_spill] sm:$0xff] }
  0x91   :  { %518 = vmatmul.mubr.bf16.gmra.mxu1 %v1013_v25  ;;  %334 = vmatprep.mubr.bf16.mxu0 %v993_v3  ;;  %v1239_v3 = vld [vmem:[#allocation19_spill] sm:$0xff]  ;;  %v1246_v25 = vld [vmem:[#allocation12_spill] sm:$0xff] }
  0x92   :  { %527 = vmatprep.mubr.bf16.mxu1 %v995_v7  ;;  %v1240_v7 = vld [vmem:[#allocation20_spill] sm:$0xff] }
  0x98   :  { %335 = vmatmul.mubr.bf16.gmra.mxu0 %v997_v8  ;;  %v1241_v8 = vld [vmem:[#allocation15_spill] sm:$0xff] }
  0x99   :  { %528 = vmatmul.mubr.bf16.gmra.mxu1 %v1000_v12  ;;  %344 = vmatprep.mubr.bf16.mxu0 %v121_v5  ;;  %v1242_v12 = vld [vmem:[#allocation16_spill] sm:$0xff] }
  0x9a   :  { %537 = vmatprep.mubr.bf16.mxu1 %v217_v6 }
  0xa0   :  { %345 = vmatmul.mubr.bf16.gmra.mxu0 %v120_v33 }
  0xa1   :  { %538 = vmatmul.mubr.bf16.gmra.mxu1 %v216_v54  ;;  %354 = vmatprep.mubr.bf16.mxu0 %v1152_v42 }
  0xa2   :  { %547 = vmatprep.mubr.bf16.mxu1 %v219_v47 }
  0xa8   :  { %355 = vmatmul.mubr.bf16.gmra.mxu0 %v122_v9 }
  0xa9   :  { %548 = vmatmul.mubr.bf16.gmra.mxu1 %v218_v1  ;;  %364 = vmatprep.mubr.bf16.mxu0 %v1140_v61 }
  0xaa   :  { %557 = vmatprep.mubr.bf16.mxu1 %v1143_v13 }
  0xb0   :  { %365 = vmatmul.mubr.bf16.gmra.mxu0 %v1146_v58 }
  0xb1   :  { %558 = vmatmul.mubr.bf16.gmra.mxu1 %v1150_v37  ;;  %374 = vmatprep.mubr.bf16.mxu0 %v1128_v22 }
  0xb2   :  { %567 = vmatprep.mubr.bf16.mxu1 %v1131_v40 }
  0xb8   :  { %375 = vmatmul.mubr.bf16.gmra.mxu0 %v1134_v59 }
  0xb9   :  { %568 = vmatmul.mubr.bf16.gmra.mxu1 %v1138_v60  ;;  %384 = vmatprep.mubr.bf16.mxu0 %v1116_v57 }
  0xba   :  { %577 = vmatprep.mubr.bf16.mxu1 %v1119_v63 }
  0xc0   :  { %385 = vmatmul.mubr.bf16.gmra.mxu0 %v1122_v18 }
  0xc1   :  { %578 = vmatmul.mubr.bf16.gmra.mxu1 %v1126_v19  ;;  %394 = vmatprep.mubr.bf16.mxu0 %v1104_v32 }
  0xc2   :  { %587 = vmatprep.mubr.bf16.mxu1 %v1107_v41 }
  0xc8   :  { %395 = vmatmul.mubr.bf16.gmra.mxu0 %v1239_v3 }
  0xc9   :  { %588 = vmatmul.mubr.bf16.gmra.mxu1 %v1240_v7  ;;  %404 = vmatprep.mubr.bf16.mxu0 %v1241_v8 }
  0xca   :  { %597 = vmatprep.mubr.bf16.mxu1 %v1242_v12 }
  0xd0   :  { %405 = vmatmul.mubr.bf16.gmra.mxu0 %v1243_v16 }
  0xd1   :  { %598 = vmatmul.mubr.bf16.gmra.mxu1 %v1244_v17  ;;  %414 = vmatprep.mubr.bf16.mxu0 %v1245_v21 }
  0xd2   :  { %607 = vmatprep.mubr.bf16.mxu1 %v1246_v25 }
  0xd8   :  { %415 = vmatmul.mubr.bf16.gmra.mxu0 %v1247_v26 }
  0xd9   :  { %608 = vmatmul.mubr.bf16.gmra.mxu1 %v1248_v30 }
 0x120   :  { %v266_v34 = vpop.f32.mrf.mxu0 }
 0x121   :  { %618 = vst [vmem:[#allocation7] sm:$0xff] %v266_v34  ;;  %682 = vst [vmem:[#allocation7 + $0x10] sm:$0xff] %v266_v34  ;;  %v459_v38 = vpop.f32.mrf.mxu1 }
 0x122   :  { %746 = vst [vmem:[#allocation7 + $0x20] sm:$0xff] %v459_v38  ;;  %810 = vst [vmem:[#allocation7 + $0x30] sm:$0xff] %v459_v38  ;;  %v268_v39 = vpop.f32.mrf.mxu0 }
 0x123   :  { %619 = vst [vmem:[#allocation7 + $0x8] sm:$0xff] %v268_v39  ;;  %683 = vst [vmem:[#allocation7 + $0x18] sm:$0xff] %v268_v39  ;;  %v461_v43 = vpop.f32.mrf.mxu1 }
 0x124   :  { %747 = vst [vmem:[#allocation7 + $0x28] sm:$0xff] %v461_v43  ;;  %811 = vst [vmem:[#allocation7 + $0x38] sm:$0xff] %v461_v43  ;;  %v270_v50 = vpop.f32.mrf.mxu0 }
 0x125   :  { %620 = vst [vmem:[#allocation7 + $0x40] sm:$0xff] %v270_v50  ;;  %684 = vst [vmem:[#allocation7 + $0x50] sm:$0xff] %v270_v50  ;;  %v463_v51 = vpop.f32.mrf.mxu1 }
 0x126   :  { %748 = vst [vmem:[#allocation7 + $0x60] sm:$0xff] %v463_v51  ;;  %812 = vst [vmem:[#allocation7 + $0x70] sm:$0xff] %v463_v51  ;;  %v272_v52 = vpop.f32.mrf.mxu0 }
 0x127   :  { %621 = vst [vmem:[#allocation7 + $0x48] sm:$0xff] %v272_v52  ;;  %685 = vst [vmem:[#allocation7 + $0x58] sm:$0xff] %v272_v52  ;;  %v465_v56 = vpop.f32.mrf.mxu1 }
 0x128   :  { %749 = vst [vmem:[#allocation7 + $0x68] sm:$0xff] %v465_v56  ;;  %813 = vst [vmem:[#allocation7 + $0x78] sm:$0xff] %v465_v56  ;;  %v276_v62 = vpop.f32.mrf.mxu0 }
 0x129   :  { %622 = vst [vmem:[#allocation7 + $0x80] sm:$0xff] %v276_v62  ;;  %686 = vst [vmem:[#allocation7 + $0x90] sm:$0xff] %v276_v62  ;;  %v469_v2 = vpop.f32.mrf.mxu1 }
 0x12a   :  { %750 = vst [vmem:[#allocation7 + $0xa0] sm:$0xff] %v469_v2  ;;  %814 = vst [vmem:[#allocation7 + $0xb0] sm:$0xff] %v469_v2  ;;  %v278_v4 = vpop.f32.mrf.mxu0 }
 0x12b   :  { %623 = vst [vmem:[#allocation7 + $0x88] sm:$0xff] %v278_v4  ;;  %687 = vst [vmem:[#allocation7 + $0x98] sm:$0xff] %v278_v4  ;;  %v471_v10 = vpop.f32.mrf.mxu1 }
 0x12c   :  { %751 = vst [vmem:[#allocation7 + $0xa8] sm:$0xff] %v471_v10  ;;  %815 = vst [vmem:[#allocation7 + $0xb8] sm:$0xff] %v471_v10  ;;  %v280_v20 = vpop.f32.mrf.mxu0 }
 0x12d   :  { %624 = vst [vmem:[#allocation7 + $0xc0] sm:$0xff] %v280_v20  ;;  %688 = vst [vmem:[#allocation7 + $0xd0] sm:$0xff] %v280_v20  ;;  %v473_v23 = vpop.f32.mrf.mxu1 }
 0x12e   :  { %752 = vst [vmem:[#allocation7 + $0xe0] sm:$0xff] %v473_v23  ;;  %816 = vst [vmem:[#allocation7 + $0xf0] sm:$0xff] %v473_v23  ;;  %v282_v24 = vpop.f32.mrf.mxu0 }
 0x12f   :  { %625 = vst [vmem:[#allocation7 + $0xc8] sm:$0xff] %v282_v24  ;;  %689 = vst [vmem:[#allocation7 + $0xd8] sm:$0xff] %v282_v24  ;;  %v475_v31 = vpop.f32.mrf.mxu1 }
 0x130   :  { %753 = vst [vmem:[#allocation7 + $0xe8] sm:$0xff] %v475_v31  ;;  %817 = vst [vmem:[#allocation7 + $0xf8] sm:$0xff] %v475_v31  ;;  %v286_v35 = vpop.f32.mrf.mxu0 }
 0x131   :  { %626 = vst [vmem:[#allocation7 + $0x100] sm:$0xff] %v286_v35  ;;  %690 = vst [vmem:[#allocation7 + $0x110] sm:$0xff] %v286_v35  ;;  %v479_v36 = vpop.f32.mrf.mxu1 }
 0x132   :  { %754 = vst [vmem:[#allocation7 + $0x120] sm:$0xff] %v479_v36  ;;  %818 = vst [vmem:[#allocation7 + $0x130] sm:$0xff] %v479_v36  ;;  %v288_v48 = vpop.f32.mrf.mxu0 }
 0x133   :  { %627 = vst [vmem:[#allocation7 + $0x108] sm:$0xff] %v288_v48  ;;  %691 = vst [vmem:[#allocation7 + $0x118] sm:$0xff] %v288_v48  ;;  %v481_v49 = vpop.f32.mrf.mxu1 }
 0x134   :  { %755 = vst [vmem:[#allocation7 + $0x128] sm:$0xff] %v481_v49  ;;  %819 = vst [vmem:[#allocation7 + $0x138] sm:$0xff] %v481_v49  ;;  %v290_v53 = vpop.f32.mrf.mxu0 }
 0x135   :  { %628 = vst [vmem:[#allocation7 + $0x140] sm:$0xff] %v290_v53  ;;  %692 = vst [vmem:[#allocation7 + $0x150] sm:$0xff] %v290_v53  ;;  %v483_v58 = vpop.f32.mrf.mxu1 }
 0x136   :  { %756 = vst [vmem:[#allocation7 + $0x160] sm:$0xff] %v483_v58  ;;  %820 = vst [vmem:[#allocation7 + $0x170] sm:$0xff] %v483_v58  ;;  %v292_v6 = vpop.f32.mrf.mxu0 }
 0x137   :  { %629 = vst [vmem:[#allocation7 + $0x148] sm:$0xff] %v292_v6  ;;  %693 = vst [vmem:[#allocation7 + $0x158] sm:$0xff] %v292_v6  ;;  %v485_v14 = vpop.f32.mrf.mxu1 }
 0x138   :  { %757 = vst [vmem:[#allocation7 + $0x168] sm:$0xff] %v485_v14  ;;  %821 = vst [vmem:[#allocation7 + $0x178] sm:$0xff] %v485_v14  ;;  %v296_v28 = vpop.f32.mrf.mxu0 }
 0x139   :  { %630 = vst [vmem:[#allocation7 + $0x180] sm:$0xff] %v296_v28  ;;  %694 = vst [vmem:[#allocation7 + $0x190] sm:$0xff] %v296_v28  ;;  %v489_v29 = vpop.f32.mrf.mxu1 }
 0x13a   :  { %758 = vst [vmem:[#allocation7 + $0x1a0] sm:$0xff] %v489_v29  ;;  %822 = vst [vmem:[#allocation7 + $0x1b0] sm:$0xff] %v489_v29  ;;  %v298_v32 = vpop.f32.mrf.mxu0 }
 0x13b   :  { %631 = vst [vmem:[#allocation7 + $0x188] sm:$0xff] %v298_v32  ;;  %695 = vst [vmem:[#allocation7 + $0x198] sm:$0xff] %v298_v32  ;;  %v491_v41 = vpop.f32.mrf.mxu1 }
 0x13c   :  { %759 = vst [vmem:[#allocation7 + $0x1a8] sm:$0xff] %v491_v41  ;;  %823 = vst [vmem:[#allocation7 + $0x1b8] sm:$0xff] %v491_v41  ;;  %v300_v54 = vpop.f32.mrf.mxu0 }
 0x13d   :  { %632 = vst [vmem:[#allocation7 + $0x1c0] sm:$0xff] %v300_v54  ;;  %696 = vst [vmem:[#allocation7 + $0x1d0] sm:$0xff] %v300_v54  ;;  %v493_v55 = vpop.f32.mrf.mxu1 }
 0x13e   :  { %760 = vst [vmem:[#allocation7 + $0x1e0] sm:$0xff] %v493_v55  ;;  %824 = vst [vmem:[#allocation7 + $0x1f0] sm:$0xff] %v493_v55  ;;  %v302_v57 = vpop.f32.mrf.mxu0 }
 0x13f   :  { %633 = vst [vmem:[#allocation7 + $0x1c8] sm:$0xff] %v302_v57  ;;  %697 = vst [vmem:[#allocation7 + $0x1d8] sm:$0xff] %v302_v57  ;;  %v495_v63 = vpop.f32.mrf.mxu1 }
 0x140   :  { %761 = vst [vmem:[#allocation7 + $0x1e8] sm:$0xff] %v495_v63  ;;  %825 = vst [vmem:[#allocation7 + $0x1f8] sm:$0xff] %v495_v63  ;;  %v306_v18 = vpop.f32.mrf.mxu0 }
 0x141   :  { %634 = vst [vmem:[#allocation7 + $0x200] sm:$0xff] %v306_v18  ;;  %698 = vst [vmem:[#allocation7 + $0x210] sm:$0xff] %v306_v18  ;;  %v499_v19 = vpop.f32.mrf.mxu1 }
 0x142   :  { %762 = vst [vmem:[#allocation7 + $0x220] sm:$0xff] %v499_v19  ;;  %826 = vst [vmem:[#allocation7 + $0x230] sm:$0xff] %v499_v19  ;;  %v308_v22 = vpop.f32.mrf.mxu0 }
 0x143   :  { %635 = vst [vmem:[#allocation7 + $0x208] sm:$0xff] %v308_v22  ;;  %699 = vst [vmem:[#allocation7 + $0x218] sm:$0xff] %v308_v22  ;;  %v501_v40 = vpop.f32.mrf.mxu1 }
 0x144   :  { %763 = vst [vmem:[#allocation7 + $0x228] sm:$0xff] %v501_v40  ;;  %827 = vst [vmem:[#allocation7 + $0x238] sm:$0xff] %v501_v40  ;;  %v310_v59 = vpop.f32.mrf.mxu0 }
 0x145   :  { %636 = vst [vmem:[#allocation7 + $0x240] sm:$0xff] %v310_v59  ;;  %700 = vst [vmem:[#allocation7 + $0x250] sm:$0xff] %v310_v59  ;;  %v503_v60 = vpop.f32.mrf.mxu1 }
 0x146   :  { %764 = vst [vmem:[#allocation7 + $0x260] sm:$0xff] %v503_v60  ;;  %828 = vst [vmem:[#allocation7 + $0x270] sm:$0xff] %v503_v60  ;;  %v312_v61 = vpop.f32.mrf.mxu0 }
 0x147   :  { %637 = vst [vmem:[#allocation7 + $0x248] sm:$0xff] %v312_v61  ;;  %701 = vst [vmem:[#allocation7 + $0x258] sm:$0xff] %v312_v61  ;;  %v505_v13 = vpop.f32.mrf.mxu1 }
 0x148   :  { %765 = vst [vmem:[#allocation7 + $0x268] sm:$0xff] %v505_v13  ;;  %829 = vst [vmem:[#allocation7 + $0x278] sm:$0xff] %v505_v13  ;;  %v316_v37 = vpop.f32.mrf.mxu0 }
 0x149   :  { %638 = vst [vmem:[#allocation7 + $0x280] sm:$0xff] %v316_v37  ;;  %702 = vst [vmem:[#allocation7 + $0x290] sm:$0xff] %v316_v37  ;;  %v509_v42 = vpop.f32.mrf.mxu1 }
 0x14a   :  { %766 = vst [vmem:[#allocation7 + $0x2a0] sm:$0xff] %v509_v42  ;;  %830 = vst [vmem:[#allocation7 + $0x2b0] sm:$0xff] %v509_v42  ;;  %v318_v44 = vpop.f32.mrf.mxu0 }
 0x14b   :  { %639 = vst [vmem:[#allocation7 + $0x288] sm:$0xff] %v318_v44  ;;  %703 = vst [vmem:[#allocation7 + $0x298] sm:$0xff] %v318_v44  ;;  %v511_v45 = vpop.f32.mrf.mxu1 }
 0x14c   :  { %767 = vst [vmem:[#allocation7 + $0x2a8] sm:$0xff] %v511_v45  ;;  %831 = vst [vmem:[#allocation7 + $0x2b8] sm:$0xff] %v511_v45  ;;  %v320_v46 = vpop.f32.mrf.mxu0 }
 0x14d   :  { %640 = vst [vmem:[#allocation7 + $0x2c0] sm:$0xff] %v320_v46  ;;  %704 = vst [vmem:[#allocation7 + $0x2d0] sm:$0xff] %v320_v46  ;;  %v513_v47 = vpop.f32.mrf.mxu1 }
 0x14e   :  { %768 = vst [vmem:[#allocation7 + $0x2e0] sm:$0xff] %v513_v47  ;;  %832 = vst [vmem:[#allocation7 + $0x2f0] sm:$0xff] %v513_v47  ;;  %v322_v0 = vpop.f32.mrf.mxu0 }
 0x14f   :  { %641 = vst [vmem:[#allocation7 + $0x2c8] sm:$0xff] %v322_v0  ;;  %705 = vst [vmem:[#allocation7 + $0x2d8] sm:$0xff] %v322_v0  ;;  %v515_v9 = vpop.f32.mrf.mxu1 }
 0x150   :  { %769 = vst [vmem:[#allocation7 + $0x2e8] sm:$0xff] %v515_v9  ;;  %833 = vst [vmem:[#allocation7 + $0x2f8] sm:$0xff] %v515_v9  ;;  %v326_v1 = vpop.f32.mrf.mxu0 }
 0x151   :  { %642 = vst [vmem:[#allocation7 + $0x300] sm:$0xff] %v326_v1  ;;  %706 = vst [vmem:[#allocation7 + $0x310] sm:$0xff] %v326_v1  ;;  %v519_v5 = vpop.f32.mrf.mxu1 }
 0x152   :  { %770 = vst [vmem:[#allocation7 + $0x320] sm:$0xff] %v519_v5  ;;  %834 = vst [vmem:[#allocation7 + $0x330] sm:$0xff] %v519_v5  ;;  %v328_v11 = vpop.f32.mrf.mxu0 }
 0x153   :  { %643 = vst [vmem:[#allocation7 + $0x308] sm:$0xff] %v328_v11  ;;  %707 = vst [vmem:[#allocation7 + $0x318] sm:$0xff] %v328_v11  ;;  %v521_v15 = vpop.f32.mrf.mxu1 }
 0x154   :  { %771 = vst [vmem:[#allocation7 + $0x328] sm:$0xff] %v521_v15  ;;  %835 = vst [vmem:[#allocation7 + $0x338] sm:$0xff] %v521_v15  ;;  %v330_v27 = vpop.f32.mrf.mxu0 }
 0x155   :  { %644 = vst [vmem:[#allocation7 + $0x340] sm:$0xff] %v330_v27  ;;  %708 = vst [vmem:[#allocation7 + $0x350] sm:$0xff] %v330_v27  ;;  %v523_v33 = vpop.f32.mrf.mxu1 }
 0x156   :  { %772 = vst [vmem:[#allocation7 + $0x360] sm:$0xff] %v523_v33  ;;  %836 = vst [vmem:[#allocation7 + $0x370] sm:$0xff] %v523_v33  ;;  %v332_v3 = vpop.f32.mrf.mxu0 }
 0x157   :  { %645 = vst [vmem:[#allocation7 + $0x348] sm:$0xff] %v332_v3  ;;  %709 = vst [vmem:[#allocation7 + $0x358] sm:$0xff] %v332_v3  ;;  %v525_v7 = vpop.f32.mrf.mxu1 }
 0x158   :  { %773 = vst [vmem:[#allocation7 + $0x368] sm:$0xff] %v525_v7  ;;  %837 = vst [vmem:[#allocation7 + $0x378] sm:$0xff] %v525_v7  ;;  %v336_v8 = vpop.f32.mrf.mxu0 }
 0x159   :  { %646 = vst [vmem:[#allocation7 + $0x380] sm:$0xff] %v336_v8  ;;  %710 = vst [vmem:[#allocation7 + $0x390] sm:$0xff] %v336_v8  ;;  %v529_v12 = vpop.f32.mrf.mxu1 }
 0x15a   :  { %774 = vst [vmem:[#allocation7 + $0x3a0] sm:$0xff] %v529_v12  ;;  %838 = vst [vmem:[#allocation7 + $0x3b0] sm:$0xff] %v529_v12  ;;  %v338_v16 = vpop.f32.mrf.mxu0 }
 0x15b   :  { %647 = vst [vmem:[#allocation7 + $0x388] sm:$0xff] %v338_v16  ;;  %711 = vst [vmem:[#allocation7 + $0x398] sm:$0xff] %v338_v16  ;;  %v531_v17 = vpop.f32.mrf.mxu1 }
 0x15c   :  { %775 = vst [vmem:[#allocation7 + $0x3a8] sm:$0xff] %v531_v17  ;;  %839 = vst [vmem:[#allocation7 + $0x3b8] sm:$0xff] %v531_v17  ;;  %v340_v21 = vpop.f32.mrf.mxu0 }
 0x15d   :  { %648 = vst [vmem:[#allocation7 + $0x3c0] sm:$0xff] %v340_v21  ;;  %712 = vst [vmem:[#allocation7 + $0x3d0] sm:$0xff] %v340_v21  ;;  %v533_v25 = vpop.f32.mrf.mxu1 }
 0x15e   :  { %776 = vst [vmem:[#allocation7 + $0x3e0] sm:$0xff] %v533_v25  ;;  %840 = vst [vmem:[#allocation7 + $0x3f0] sm:$0xff] %v533_v25  ;;  %v342_v26 = vpop.f32.mrf.mxu0 }
 0x15f   :  { %649 = vst [vmem:[#allocation7 + $0x3c8] sm:$0xff] %v342_v26  ;;  %713 = vst [vmem:[#allocation7 + $0x3d8] sm:$0xff] %v342_v26  ;;  %v535_v30 = vpop.f32.mrf.mxu1 }
 0x160   :  { %777 = vst [vmem:[#allocation7 + $0x3e8] sm:$0xff] %v535_v30  ;;  %841 = vst [vmem:[#allocation7 + $0x3f8] sm:$0xff] %v535_v30  ;;  %v346_v34 = vpop.f32.mrf.mxu0 }
 0x161   :  { %650 = vst [vmem:[#allocation7 + $0x400] sm:$0xff] %v346_v34  ;;  %714 = vst [vmem:[#allocation7 + $0x410] sm:$0xff] %v346_v34  ;;  %v539_v38 = vpop.f32.mrf.mxu1 }
 0x162   :  { %778 = vst [vmem:[#allocation7 + $0x420] sm:$0xff] %v539_v38  ;;  %842 = vst [vmem:[#allocation7 + $0x430] sm:$0xff] %v539_v38  ;;  %v348_v39 = vpop.f32.mrf.mxu0 }
 0x163   :  { %651 = vst [vmem:[#allocation7 + $0x408] sm:$0xff] %v348_v39  ;;  %715 = vst [vmem:[#allocation7 + $0x418] sm:$0xff] %v348_v39  ;;  %v541_v43 = vpop.f32.mrf.mxu1 }
 0x164   :  { %779 = vst [vmem:[#allocation7 + $0x428] sm:$0xff] %v541_v43  ;;  %843 = vst [vmem:[#allocation7 + $0x438] sm:$0xff] %v541_v43  ;;  %v350_v50 = vpop.f32.mrf.mxu0 }
 0x165   :  { %652 = vst [vmem:[#allocation7 + $0x440] sm:$0xff] %v350_v50  ;;  %716 = vst [vmem:[#allocation7 + $0x450] sm:$0xff] %v350_v50  ;;  %v543_v51 = vpop.f32.mrf.mxu1 }
 0x166   :  { %780 = vst [vmem:[#allocation7 + $0x460] sm:$0xff] %v543_v51  ;;  %844 = vst [vmem:[#allocation7 + $0x470] sm:$0xff] %v543_v51  ;;  %v352_v52 = vpop.f32.mrf.mxu0 }
 0x167   :  { %653 = vst [vmem:[#allocation7 + $0x448] sm:$0xff] %v352_v52  ;;  %717 = vst [vmem:[#allocation7 + $0x458] sm:$0xff] %v352_v52  ;;  %v545_v56 = vpop.f32.mrf.mxu1 }
 0x168   :  { %781 = vst [vmem:[#allocation7 + $0x468] sm:$0xff] %v545_v56  ;;  %845 = vst [vmem:[#allocation7 + $0x478] sm:$0xff] %v545_v56  ;;  %v356_v62 = vpop.f32.mrf.mxu0 }
 0x169   :  { %654 = vst [vmem:[#allocation7 + $0x480] sm:$0xff] %v356_v62  ;;  %718 = vst [vmem:[#allocation7 + $0x490] sm:$0xff] %v356_v62  ;;  %v549_v2 = vpop.f32.mrf.mxu1 }
 0x16a   :  { %782 = vst [vmem:[#allocation7 + $0x4a0] sm:$0xff] %v549_v2  ;;  %846 = vst [vmem:[#allocation7 + $0x4b0] sm:$0xff] %v549_v2  ;;  %v358_v4 = vpop.f32.mrf.mxu0 }
 0x16b   :  { %655 = vst [vmem:[#allocation7 + $0x488] sm:$0xff] %v358_v4  ;;  %719 = vst [vmem:[#allocation7 + $0x498] sm:$0xff] %v358_v4  ;;  %v551_v10 = vpop.f32.mrf.mxu1 }
 0x16c   :  { %783 = vst [vmem:[#allocation7 + $0x4a8] sm:$0xff] %v551_v10  ;;  %847 = vst [vmem:[#allocation7 + $0x4b8] sm:$0xff] %v551_v10  ;;  %v360_v20 = vpop.f32.mrf.mxu0 }
 0x16d   :  { %656 = vst [vmem:[#allocation7 + $0x4c0] sm:$0xff] %v360_v20  ;;  %720 = vst [vmem:[#allocation7 + $0x4d0] sm:$0xff] %v360_v20  ;;  %v553_v23 = vpop.f32.mrf.mxu1 }
 0x16e   :  { %784 = vst [vmem:[#allocation7 + $0x4e0] sm:$0xff] %v553_v23  ;;  %848 = vst [vmem:[#allocation7 + $0x4f0] sm:$0xff] %v553_v23  ;;  %v362_v24 = vpop.f32.mrf.mxu0 }
 0x16f   :  { %657 = vst [vmem:[#allocation7 + $0x4c8] sm:$0xff] %v362_v24  ;;  %721 = vst [vmem:[#allocation7 + $0x4d8] sm:$0xff] %v362_v24  ;;  %v555_v31 = vpop.f32.mrf.mxu1 }
 0x170   :  { %785 = vst [vmem:[#allocation7 + $0x4e8] sm:$0xff] %v555_v31  ;;  %849 = vst [vmem:[#allocation7 + $0x4f8] sm:$0xff] %v555_v31  ;;  %v366_v35 = vpop.f32.mrf.mxu0 }
 0x171   :  { %658 = vst [vmem:[#allocation7 + $0x500] sm:$0xff] %v366_v35  ;;  %722 = vst [vmem:[#allocation7 + $0x510] sm:$0xff] %v366_v35  ;;  %v559_v36 = vpop.f32.mrf.mxu1 }
 0x172   :  { %786 = vst [vmem:[#allocation7 + $0x520] sm:$0xff] %v559_v36  ;;  %850 = vst [vmem:[#allocation7 + $0x530] sm:$0xff] %v559_v36  ;;  %v368_v48 = vpop.f32.mrf.mxu0 }
 0x173   :  { %659 = vst [vmem:[#allocation7 + $0x508] sm:$0xff] %v368_v48  ;;  %723 = vst [vmem:[#allocation7 + $0x518] sm:$0xff] %v368_v48  ;;  %v561_v49 = vpop.f32.mrf.mxu1 }
 0x174   :  { %787 = vst [vmem:[#allocation7 + $0x528] sm:$0xff] %v561_v49  ;;  %851 = vst [vmem:[#allocation7 + $0x538] sm:$0xff] %v561_v49  ;;  %v370_v53 = vpop.f32.mrf.mxu0 }
 0x175   :  { %660 = vst [vmem:[#allocation7 + $0x540] sm:$0xff] %v370_v53  ;;  %724 = vst [vmem:[#allocation7 + $0x550] sm:$0xff] %v370_v53  ;;  %v563_v58 = vpop.f32.mrf.mxu1 }
 0x176   :  { %788 = vst [vmem:[#allocation7 + $0x560] sm:$0xff] %v563_v58  ;;  %852 = vst [vmem:[#allocation7 + $0x570] sm:$0xff] %v563_v58  ;;  %v372_v6 = vpop.f32.mrf.mxu0 }
 0x177   :  { %661 = vst [vmem:[#allocation7 + $0x548] sm:$0xff] %v372_v6  ;;  %725 = vst [vmem:[#allocation7 + $0x558] sm:$0xff] %v372_v6  ;;  %v565_v14 = vpop.f32.mrf.mxu1 }
 0x178   :  { %789 = vst [vmem:[#allocation7 + $0x568] sm:$0xff] %v565_v14  ;;  %853 = vst [vmem:[#allocation7 + $0x578] sm:$0xff] %v565_v14  ;;  %v376_v28 = vpop.f32.mrf.mxu0 }
 0x179   :  { %662 = vst [vmem:[#allocation7 + $0x580] sm:$0xff] %v376_v28  ;;  %726 = vst [vmem:[#allocation7 + $0x590] sm:$0xff] %v376_v28  ;;  %v569_v29 = vpop.f32.mrf.mxu1 }
 0x17a   :  { %790 = vst [vmem:[#allocation7 + $0x5a0] sm:$0xff] %v569_v29  ;;  %854 = vst [vmem:[#allocation7 + $0x5b0] sm:$0xff] %v569_v29  ;;  %v378_v32 = vpop.f32.mrf.mxu0 }
 0x17b   :  { %663 = vst [vmem:[#allocation7 + $0x588] sm:$0xff] %v378_v32  ;;  %727 = vst [vmem:[#allocation7 + $0x598] sm:$0xff] %v378_v32  ;;  %v571_v41 = vpop.f32.mrf.mxu1 }
 0x17c   :  { %791 = vst [vmem:[#allocation7 + $0x5a8] sm:$0xff] %v571_v41  ;;  %855 = vst [vmem:[#allocation7 + $0x5b8] sm:$0xff] %v571_v41  ;;  %v380_v54 = vpop.f32.mrf.mxu0 }
 0x17d   :  { %664 = vst [vmem:[#allocation7 + $0x5c0] sm:$0xff] %v380_v54  ;;  %728 = vst [vmem:[#allocation7 + $0x5d0] sm:$0xff] %v380_v54  ;;  %v573_v55 = vpop.f32.mrf.mxu1 }
 0x17e   :  { %792 = vst [vmem:[#allocation7 + $0x5e0] sm:$0xff] %v573_v55  ;;  %856 = vst [vmem:[#allocation7 + $0x5f0] sm:$0xff] %v573_v55  ;;  %v382_v57 = vpop.f32.mrf.mxu0 }
 0x17f   :  { %665 = vst [vmem:[#allocation7 + $0x5c8] sm:$0xff] %v382_v57  ;;  %729 = vst [vmem:[#allocation7 + $0x5d8] sm:$0xff] %v382_v57  ;;  %v575_v63 = vpop.f32.mrf.mxu1 }
 0x180   :  { %793 = vst [vmem:[#allocation7 + $0x5e8] sm:$0xff] %v575_v63  ;;  %857 = vst [vmem:[#allocation7 + $0x5f8] sm:$0xff] %v575_v63  ;;  %v386_v18 = vpop.f32.mrf.mxu0 }
 0x181   :  { %666 = vst [vmem:[#allocation7 + $0x600] sm:$0xff] %v386_v18  ;;  %730 = vst [vmem:[#allocation7 + $0x610] sm:$0xff] %v386_v18  ;;  %v579_v19 = vpop.f32.mrf.mxu1 }
 0x182   :  { %794 = vst [vmem:[#allocation7 + $0x620] sm:$0xff] %v579_v19  ;;  %858 = vst [vmem:[#allocation7 + $0x630] sm:$0xff] %v579_v19  ;;  %v388_v22 = vpop.f32.mrf.mxu0 }
 0x183   :  { %667 = vst [vmem:[#allocation7 + $0x608] sm:$0xff] %v388_v22  ;;  %731 = vst [vmem:[#allocation7 + $0x618] sm:$0xff] %v388_v22  ;;  %v581_v40 = vpop.f32.mrf.mxu1 }
 0x184   :  { %795 = vst [vmem:[#allocation7 + $0x628] sm:$0xff] %v581_v40  ;;  %859 = vst [vmem:[#allocation7 + $0x638] sm:$0xff] %v581_v40  ;;  %v390_v59 = vpop.f32.mrf.mxu0 }
 0x185   :  { %668 = vst [vmem:[#allocation7 + $0x640] sm:$0xff] %v390_v59  ;;  %732 = vst [vmem:[#allocation7 + $0x650] sm:$0xff] %v390_v59  ;;  %v583_v60 = vpop.f32.mrf.mxu1 }
 0x186   :  { %796 = vst [vmem:[#allocation7 + $0x660] sm:$0xff] %v583_v60  ;;  %860 = vst [vmem:[#allocation7 + $0x670] sm:$0xff] %v583_v60  ;;  %v392_v61 = vpop.f32.mrf.mxu0 }
 0x187   :  { %669 = vst [vmem:[#allocation7 + $0x648] sm:$0xff] %v392_v61  ;;  %733 = vst [vmem:[#allocation7 + $0x658] sm:$0xff] %v392_v61  ;;  %v585_v13 = vpop.f32.mrf.mxu1 }
 0x188   :  { %797 = vst [vmem:[#allocation7 + $0x668] sm:$0xff] %v585_v13  ;;  %861 = vst [vmem:[#allocation7 + $0x678] sm:$0xff] %v585_v13  ;;  %v396_v37 = vpop.f32.mrf.mxu0 }
 0x189   :  { %670 = vst [vmem:[#allocation7 + $0x680] sm:$0xff] %v396_v37  ;;  %734 = vst [vmem:[#allocation7 + $0x690] sm:$0xff] %v396_v37  ;;  %v589_v42 = vpop.f32.mrf.mxu1 }
 0x18a   :  { %798 = vst [vmem:[#allocation7 + $0x6a0] sm:$0xff] %v589_v42  ;;  %862 = vst [vmem:[#allocation7 + $0x6b0] sm:$0xff] %v589_v42  ;;  %v398_v44 = vpop.f32.mrf.mxu0 }
 0x18b   :  { %671 = vst [vmem:[#allocation7 + $0x688] sm:$0xff] %v398_v44  ;;  %735 = vst [vmem:[#allocation7 + $0x698] sm:$0xff] %v398_v44  ;;  %v591_v45 = vpop.f32.mrf.mxu1 }
 0x18c   :  { %799 = vst [vmem:[#allocation7 + $0x6a8] sm:$0xff] %v591_v45  ;;  %863 = vst [vmem:[#allocation7 + $0x6b8] sm:$0xff] %v591_v45  ;;  %v400_v46 = vpop.f32.mrf.mxu0 }
 0x18d   :  { %672 = vst [vmem:[#allocation7 + $0x6c0] sm:$0xff] %v400_v46  ;;  %736 = vst [vmem:[#allocation7 + $0x6d0] sm:$0xff] %v400_v46  ;;  %v593_v47 = vpop.f32.mrf.mxu1 }
 0x18e   :  { %800 = vst [vmem:[#allocation7 + $0x6e0] sm:$0xff] %v593_v47  ;;  %864 = vst [vmem:[#allocation7 + $0x6f0] sm:$0xff] %v593_v47  ;;  %v402_v0 = vpop.f32.mrf.mxu0 }
 0x18f   :  { %673 = vst [vmem:[#allocation7 + $0x6c8] sm:$0xff] %v402_v0  ;;  %737 = vst [vmem:[#allocation7 + $0x6d8] sm:$0xff] %v402_v0  ;;  %v595_v9 = vpop.f32.mrf.mxu1 }
 0x190   :  { %801 = vst [vmem:[#allocation7 + $0x6e8] sm:$0xff] %v595_v9  ;;  %865 = vst [vmem:[#allocation7 + $0x6f8] sm:$0xff] %v595_v9  ;;  %v406_v1 = vpop.f32.mrf.mxu0 }
 0x191   :  { %674 = vst [vmem:[#allocation7 + $0x700] sm:$0xff] %v406_v1  ;;  %738 = vst [vmem:[#allocation7 + $0x710] sm:$0xff] %v406_v1  ;;  %v599_v5 = vpop.f32.mrf.mxu1 }
 0x192   :  { %802 = vst [vmem:[#allocation7 + $0x720] sm:$0xff] %v599_v5  ;;  %866 = vst [vmem:[#allocation7 + $0x730] sm:$0xff] %v599_v5  ;;  %v408_v11 = vpop.f32.mrf.mxu0 }
 0x193   :  { %675 = vst [vmem:[#allocation7 + $0x708] sm:$0xff] %v408_v11  ;;  %739 = vst [vmem:[#allocation7 + $0x718] sm:$0xff] %v408_v11  ;;  %v601_v15 = vpop.f32.mrf.mxu1 }
 0x194   :  { %803 = vst [vmem:[#allocation7 + $0x728] sm:$0xff] %v601_v15  ;;  %867 = vst [vmem:[#allocation7 + $0x738] sm:$0xff] %v601_v15  ;;  %v410_v27 = vpop.f32.mrf.mxu0 }
 0x195   :  { %676 = vst [vmem:[#allocation7 + $0x740] sm:$0xff] %v410_v27  ;;  %740 = vst [vmem:[#allocation7 + $0x750] sm:$0xff] %v410_v27  ;;  %v603_v33 = vpop.f32.mrf.mxu1 }
 0x196   :  { %804 = vst [vmem:[#allocation7 + $0x760] sm:$0xff] %v603_v33  ;;  %868 = vst [vmem:[#allocation7 + $0x770] sm:$0xff] %v603_v33  ;;  %v412_v3 = vpop.f32.mrf.mxu0 }
 0x197   :  { %677 = vst [vmem:[#allocation7 + $0x748] sm:$0xff] %v412_v3  ;;  %741 = vst [vmem:[#allocation7 + $0x758] sm:$0xff] %v412_v3  ;;  %v605_v7 = vpop.f32.mrf.mxu1 }
 0x198   :  { %805 = vst [vmem:[#allocation7 + $0x768] sm:$0xff] %v605_v7  ;;  %869 = vst [vmem:[#allocation7 + $0x778] sm:$0xff] %v605_v7  ;;  %v416_v8 = vpop.f32.mrf.mxu0 }
 0x199   :  { %678 = vst [vmem:[#allocation7 + $0x780] sm:$0xff] %v416_v8  ;;  %742 = vst [vmem:[#allocation7 + $0x790] sm:$0xff] %v416_v8  ;;  %v609_v12 = vpop.f32.mrf.mxu1 }
 0x19a   :  { %806 = vst [vmem:[#allocation7 + $0x7a0] sm:$0xff] %v609_v12  ;;  %870 = vst [vmem:[#allocation7 + $0x7b0] sm:$0xff] %v609_v12  ;;  %v418_v16 = vpop.f32.mrf.mxu0 }
 0x19b   :  { %679 = vst [vmem:[#allocation7 + $0x788] sm:$0xff] %v418_v16  ;;  %743 = vst [vmem:[#allocation7 + $0x798] sm:$0xff] %v418_v16  ;;  %v611_v17 = vpop.f32.mrf.mxu1 }
 0x19c   :  { %807 = vst [vmem:[#allocation7 + $0x7a8] sm:$0xff] %v611_v17  ;;  %871 = vst [vmem:[#allocation7 + $0x7b8] sm:$0xff] %v611_v17  ;;  %v420_v21 = vpop.f32.mrf.mxu0 }
 0x19d   :  { %680 = vst [vmem:[#allocation7 + $0x7c0] sm:$0xff] %v420_v21  ;;  %744 = vst [vmem:[#allocation7 + $0x7d0] sm:$0xff] %v420_v21  ;;  %v613_v25 = vpop.f32.mrf.mxu1 }
 0x19e   :  { %808 = vst [vmem:[#allocation7 + $0x7e0] sm:$0xff] %v613_v25  ;;  %872 = vst [vmem:[#allocation7 + $0x7f0] sm:$0xff] %v613_v25  ;;  %v422_v26 = vpop.f32.mrf.mxu0 }
 0x19f   :  { %681 = vst [vmem:[#allocation7 + $0x7c8] sm:$0xff] %v422_v26  ;;  %745 = vst [vmem:[#allocation7 + $0x7d8] sm:$0xff] %v422_v26  ;;  %v615_v30 = vpop.f32.mrf.mxu1 }
 0x1a0   :  { %809 = vst [vmem:[#allocation7 + $0x7e8] sm:$0xff] %v615_v30  ;;  %873 = vst [vmem:[#allocation7 + $0x7f8] sm:$0xff] %v615_v30 }
 0x1a1   :  { %950 = shalt.err (!%p947_p0)
}
 0x1a2   :  { %s970_s22 = smov 1024   ;;  %s971_s23 = smov 64  }
 0x1a3   :  { %885 = dma.vmem_to_hbm [thread:$0]  %s880_s1, 32768, %s1218_s2, [#allocation4], %s970_s22, %s970_s22, %s971_s23  }
 0x1a4   :  { %963 = dma.done.wait [#allocation4], 32768  }
 0x1a5   :  { %964 = vsyncadd [#allocation4], 4294934528 }
 0x1a6   :  { %889 = vsyncpa [#allocation3], 1 }
 0x1a7   :  { %890 = vsyncpa [#allocation6], 1 }
 0x1a8   :  { %891 = vsyncpa [#allocation4], 1 }

</bundles_post_ra>
